<compile_context>
chip_gen: v5e
topology: v5e:2x2
jax: 0.10.0
libtpu: 0.0.40
codegen_flags: <defaults>
</compile_context>

<pallas_src>
import jax
import jax.numpy as jnp
from jax.experimental import pallas as pl
from jax.experimental.pallas import tpu as pltpu


def _make_kernel(B_blk, C, H, W, K, pad):
    HW = H * W
    S = pad * (W + 1)  # max |flat tap offset| = pad*W + pad

    def kernel(b_ref, w_ref, mask_ref, x_ref, out_ref, attn_ref, xpad_ref):
        # b_ref:    (1,)                 SMEM  conv bias
        # w_ref:    (C, K*K)             VMEM  conv weights, index [c, kh*K + kw]
        # mask_ref: (K, HW)              VMEM  f32 0/1 row-boundary mask per kw offset
        # x_ref:    (B_blk, C, HW)       VMEM  lane-dense input block
        # out_ref:  (B_blk, C, HW)       VMEM  lane-dense output block
        # attn_ref: (B_blk, 1, HW)       VMEM  lane-dense attention map block
        # xpad_ref: (B_blk, C, HW+2S)    VMEM  f32 scratch: flat, zero-padded both ends
        x = x_ref[...].astype(jnp.float32)  # (B_blk, C, HW); no-op cast for f32

        # Rebuild the flat zero-padded copy each step (pads are tiny: 2*B_blk*C*S f32).
        if S > 0:
            zpad = jnp.zeros((B_blk, C, S), jnp.float32)
            xpad_ref[:, :, 0:S] = zpad
            xpad_ref[:, :, S + HW:S + HW + S] = zpad
        xpad_ref[:, :, S:S + HW] = x

        acc = jnp.zeros((B_blk, C, HW), jnp.float32)

        # Direct conv, fully unrolled (K*K = 9 taps at test shapes).  kw outer so the
        # row-boundary mask is applied once per kw group.  Each tap is one
        # (C,1) x (B_blk,C,HW) broadcast FMA -- sublane-dense VPU work.
        for kw in range(K):
            dw = kw - pad
            partial = None
            for kh in range(K):
                shift = (kh - pad) * W + dw
                t = kh * K + kw
                slab = xpad_ref[:, :, S + shift:S + shift + HW]   # (B_blk, C, HW) f32
                w_col = w_ref[:, t:t + 1]                          # (C, 1) -> lane bcast
                term = w_col * slab
                partial = term if partial is None else partial + term
            if dw == 0:
                acc = acc + partial
            else:
                acc = acc + partial * mask_ref[kw:kw + 1, :]       # (1,HW) bcast over B,C

        # One sublane (channel) reduction on the XLU, then bias add + tanh on the EUP.
        pre = jnp.sum(acc, axis=1, keepdims=True) + b_ref[0]       # (B_blk, 1, HW) f32
        attn = jnp.tanh(pre)

        attn_ref[...] = attn.astype(attn_ref.dtype)                # lane-dense store
        out_ref[...] = (x + attn).astype(out_ref.dtype)            # broadcast residual

    return kernel


def _pick_batch_block(B, C, HW, S):
    """Largest divisor of B that is <= 8, fits a conservative per-step VMEM budget
    (sized for v7x's 32 MiB scoped default), and keeps >= 2 grid steps when B >= 2
    so both v7x TensorCores get work."""
    def step_bytes(d):
        # x + out double-buffered blocks, attn double-buffered, f32 padded scratch
        return 4 * (2 * 2 * d * C * HW + 2 * d * HW + d * C * (HW + 2 * S))

    cands = [d for d in range(1, B + 1)
             if B % d == 0 and d <= 8 and step_bytes(d) <= 24 * 1024 * 1024]
    if not cands:
        cands = [1]
    two_step = [d for d in cands if B // d >= 2]
    return max(two_step if two_step else cands)


def spatial_attention(x, weight, bias, kernel_size):
    """x: (B, C, H, W). weight: (1, C, K, K). bias: (1,). Returns (output, attn)."""
    B, C, H, W = x.shape
    K = kernel_size
    pad = (K - 1) // 2
    HW = H * W
    S = pad * (W + 1)
    KK = K * K

    B_blk = _pick_batch_block(B, C, HW, S)
    n_blocks = B // B_blk

    # Free reshape (contiguous trailing dims) -> lane-dense view for the kernel.
    x_flat = x.reshape(B, C, HW)
    w2d = weight.reshape(C, KK).astype(jnp.float32)   # [c, kh*K + kw]
    b = bias.astype(jnp.float32)

    # Per-kw lane-validity masks: zero where the flat kw shift crosses an image-row
    # boundary.  Depends only on kw -> K masks, built once here.
    w_idx = jnp.arange(HW, dtype=jnp.int32) % W
    masks = jnp.stack(
        [((w_idx + (kw - pad) >= 0) & (w_idx + (kw - pad) < W)).astype(jnp.float32)
         for kw in range(K)],
        axis=0)  # (K, HW)

    kern = _make_kernel(B_blk, C, H, W, K, pad)

    cost = pl.CostEstimate(
        flops=int(B * HW * (2 * C * KK + (K + 2) * C + 1)),
        transcendentals=int(B * HW),
        bytes_accessed=int(4 * (2 * B * C * HW + B * HW + K * HW + C * KK + 1)),
    )

    out_flat, attn_flat = pl.pallas_call(
        kern,
        out_shape=(
            jax.ShapeDtypeStruct((B, C, HW), x.dtype),
            jax.ShapeDtypeStruct((B, 1, HW), x.dtype),
        ),
        grid=(n_blocks,),
        in_specs=[
            pl.BlockSpec(memory_space=pltpu.MemorySpace.SMEM),        # conv bias (scalar)
            pl.BlockSpec((C, KK), lambda i: (0, 0)),                  # conv weights (VMEM)
            pl.BlockSpec((K, HW), lambda i: (0, 0)),                  # kw masks (constant)
            pl.BlockSpec((B_blk, C, HW), lambda i: (i, 0, 0)),        # x, lane-dense
        ],
        out_specs=(
            pl.BlockSpec((B_blk, C, HW), lambda i: (i, 0, 0)),        # out, lane-dense
            pl.BlockSpec((B_blk, 1, HW), lambda i: (i, 0, 0)),        # attn, lane-dense
        ),
        scratch_shapes=[pltpu.VMEM((B_blk, C, HW + 2 * S), jnp.float32)],
        compiler_params=pltpu.CompilerParams(
            dimension_semantics=("parallel",),   # batch-block axis -> both TCs on v7x
        ),
        cost_estimate=cost,
    )(b, w2d, masks, x_flat)

    # Free reshapes back to the module's NCHW outputs.
    return out_flat.reshape(B, C, H, W), attn_flat.reshape(B, 1, H, W)


def _reference(x, weight, bias, kernel_size):
    # Plain-JAX reference matching PyTorch Conv2d(C, 1, K, stride=1, pad=(K-1)//2).
    pad = (kernel_size - 1) // 2
    conv = jax.lax.conv_general_dilated(
        x, weight, window_strides=(1, 1),
        padding=[(pad, pad), (pad, pad)],
        dimension_numbers=("NCHW", "OIHW", "NCHW"),
    ) + bias.reshape(1, 1, 1, 1)
    attn = jnp.tanh(conv)
    return x + attn, attn


if __name__ == "__main__":
    B, C, H, W = 2, 4, 16, 16
    K = 3

    key = jax.random.PRNGKey(0)
    kx, kw, kb = jax.random.split(key, 3)

    x = jax.random.normal(kx, (B, C, H, W), dtype=jnp.float32)
    # deterministic synthetic conv parameters (shapes match nn.Conv2d(C, 1, K))
    fan_in = C * K * K
    bound = 1.0 / (fan_in ** 0.5)
    weight = jax.random.uniform(kw, (1, C, K, K), jnp.float32, -bound, bound)
    bias = jax.random.uniform(kb, (1,), jnp.float32, -bound, bound)

    out, attn = spatial_attention(x, weight, bias, K)
    out = jax.block_until_ready(out)
    attn = jax.block_until_ready(attn)

    ref_out, ref_attn = _reference(x, weight, bias, K)
    assert out.shape == (B, C, H, W) and attn.shape == (B, 1, H, W)
    assert jnp.allclose(out, ref_out, atol=1e-5, rtol=1e-5)
    assert jnp.allclose(attn, ref_attn, atol=1e-5, rtol=1e-5)

    print("KERNEL_OK")
</pallas_src>

<mosaic_0001>
module attributes {stable_mosaic.version = 11 : i64} {
  func.func @kernel(%arg0: i32, %arg1: memref<1xf32, #tpu.memory_space<smem>>, %arg2: memref<4x9xf32, #tpu.memory_space<vmem>>, %arg3: memref<3x256xf32, #tpu.memory_space<vmem>>, %arg4: memref<1x4x256xf32, #tpu.memory_space<vmem>>, %arg5: memref<1x4x256xf32, #tpu.memory_space<vmem>>, %arg6: memref<1x1x256xf32, #tpu.memory_space<vmem>>, %arg7: memref<1x4x290xf32, #tpu.memory_space<vmem>>) attributes {dimension_semantics = [#tpu.dimension_semantics<parallel>], iteration_bounds = array<i64: 2>, scalar_prefetch = 0 : i64, scratch_operands = 1 : i64, tpu.core_type = #tpu.core_type<tc>, window_params = [{transform_indices = @transform_0, window_bounds = array<i64: 1>}, {pipeline_mode = #tpu.pipeline_mode<synchronous>, transform_indices = @transform_1, window_bounds = array<i64: 4, 9>}, {pipeline_mode = #tpu.pipeline_mode<synchronous>, transform_indices = @transform_2, window_bounds = array<i64: 3, 256>}, {transform_indices = @transform_3, window_bounds = array<i64: 1, 4, 256>}, {transform_indices = @transform_4, window_bounds = array<i64: 1, 4, 256>}, {transform_indices = @transform_5, window_bounds = array<i64: 1, 1, 256>}]} {
    %c0 = arith.constant 0 : index
    %c0_0 = arith.constant 0 : index
    %c0_1 = arith.constant 0 : index
    %0 = vector.load %arg4[%c0, %c0_0, %c0_1] : memref<1x4x256xf32, #tpu.memory_space<vmem>>, vector<1x4x256xf32>
    %cst = arith.constant 0.000000e+00 : f32
    %1 = vector.broadcast %cst : f32 to vector<1x4x17xf32>
    %c0_2 = arith.constant 0 : index
    %c0_3 = arith.constant 0 : index
    %c0_4 = arith.constant 0 : index
    %2 = vector.load %arg7[%c0_2, %c0_3, %c0_4] : memref<1x4x290xf32, #tpu.memory_space<vmem>>, vector<1x4x17xf32>
    tpu.vector_store %arg7[%c0_2, %c0_3, %c0_4], %1 {strides = array<i32>} : memref<1x4x290xf32, #tpu.memory_space<vmem>>, vector<1x4x17xf32>,
    %c0_5 = arith.constant 0 : index
    %c0_6 = arith.constant 0 : index
    %c273 = arith.constant 273 : index
    %3 = vector.load %arg7[%c0_5, %c0_6, %c273] : memref<1x4x290xf32, #tpu.memory_space<vmem>>, vector<1x4x17xf32>
    tpu.vector_store %arg7[%c0_5, %c0_6, %c273], %1 {strides = array<i32>} : memref<1x4x290xf32, #tpu.memory_space<vmem>>, vector<1x4x17xf32>,
    %c0_7 = arith.constant 0 : index
    %c0_8 = arith.constant 0 : index
    %c17 = arith.constant 17 : index
    %4 = vector.load %arg7[%c0_7, %c0_8, %c17] : memref<1x4x290xf32, #tpu.memory_space<vmem>>, vector<1x4x256xf32>
    tpu.vector_store %arg7[%c0_7, %c0_8, %c17], %0 {strides = array<i32>} : memref<1x4x290xf32, #tpu.memory_space<vmem>>, vector<1x4x256xf32>,
    %cst_9 = arith.constant 0.000000e+00 : f32
    %5 = vector.broadcast %cst_9 : f32 to vector<1x4x256xf32>
    %c0_10 = arith.constant 0 : index
    %c0_11 = arith.constant 0 : index
    %c0_12 = arith.constant 0 : index
    %6 = vector.load %arg7[%c0_10, %c0_11, %c0_12] : memref<1x4x290xf32, #tpu.memory_space<vmem>>, vector<1x4x256xf32>
    %c0_13 = arith.constant 0 : index
    %c0_14 = arith.constant 0 : index
    %7 = vector.load %arg2[%c0_13, %c0_14] : memref<4x9xf32, #tpu.memory_space<vmem>>, vector<4x1xf32>
    %8 = vector.shape_cast %7 : vector<4x1xf32> to vector<1x4x1xf32>
    %9 = vector.broadcast %8 : vector<1x4x1xf32> to vector<1x4x256xf32>
    %10 = arith.mulf %9, %6 : vector<1x4x256xf32>
    %c0_15 = arith.constant 0 : index
    %c0_16 = arith.constant 0 : index
    %c16 = arith.constant 16 : index
    %11 = vector.load %arg7[%c0_15, %c0_16, %c16] : memref<1x4x290xf32, #tpu.memory_space<vmem>>, vector<1x4x256xf32>
    %c0_17 = arith.constant 0 : index
    %c3 = arith.constant 3 : index
    %12 = vector.load %arg2[%c0_17, %c3] : memref<4x9xf32, #tpu.memory_space<vmem>>, vector<4x1xf32>
    %13 = vector.shape_cast %12 : vector<4x1xf32> to vector<1x4x1xf32>
    %14 = vector.broadcast %13 : vector<1x4x1xf32> to vector<1x4x256xf32>
    %15 = arith.mulf %14, %11 : vector<1x4x256xf32>
    %16 = arith.addf %10, %15 : vector<1x4x256xf32>
    %c0_18 = arith.constant 0 : index
    %c0_19 = arith.constant 0 : index
    %c32 = arith.constant 32 : index
    %17 = vector.load %arg7[%c0_18, %c0_19, %c32] : memref<1x4x290xf32, #tpu.memory_space<vmem>>, vector<1x4x256xf32>
    %c0_20 = arith.constant 0 : index
    %c6 = arith.constant 6 : index
    %18 = vector.load %arg2[%c0_20, %c6] : memref<4x9xf32, #tpu.memory_space<vmem>>, vector<4x1xf32>
    %19 = vector.shape_cast %18 : vector<4x1xf32> to vector<1x4x1xf32>
    %20 = vector.broadcast %19 : vector<1x4x1xf32> to vector<1x4x256xf32>
    %21 = arith.mulf %20, %17 : vector<1x4x256xf32>
    %22 = arith.addf %16, %21 : vector<1x4x256xf32>
    %c0_21 = arith.constant 0 : index
    %c0_22 = arith.constant 0 : index
    %23 = vector.load %arg3[%c0_21, %c0_22] : memref<3x256xf32, #tpu.memory_space<vmem>>, vector<1x256xf32>
    %24 = vector.shape_cast %23 : vector<1x256xf32> to vector<1x1x256xf32>
    %25 = vector.broadcast %24 : vector<1x1x256xf32> to vector<1x4x256xf32>
    %26 = arith.mulf %22, %25 : vector<1x4x256xf32>
    %27 = arith.addf %5, %26 : vector<1x4x256xf32>
    %c0_23 = arith.constant 0 : index
    %c0_24 = arith.constant 0 : index
    %c1 = arith.constant 1 : index
    %28 = vector.load %arg7[%c0_23, %c0_24, %c1] : memref<1x4x290xf32, #tpu.memory_space<vmem>>, vector<1x4x256xf32>
    %c0_25 = arith.constant 0 : index
    %c1_26 = arith.constant 1 : index
    %29 = vector.load %arg2[%c0_25, %c1_26] : memref<4x9xf32, #tpu.memory_space<vmem>>, vector<4x1xf32>
    %30 = vector.shape_cast %29 : vector<4x1xf32> to vector<1x4x1xf32>
    %31 = vector.broadcast %30 : vector<1x4x1xf32> to vector<1x4x256xf32>
    %32 = arith.mulf %31, %28 : vector<1x4x256xf32>
    %c0_27 = arith.constant 0 : index
    %c0_28 = arith.constant 0 : index
    %c17_29 = arith.constant 17 : index
    %33 = vector.load %arg7[%c0_27, %c0_28, %c17_29] : memref<1x4x290xf32, #tpu.memory_space<vmem>>, vector<1x4x256xf32>
    %c0_30 = arith.constant 0 : index
    %c4 = arith.constant 4 : index
    %34 = vector.load %arg2[%c0_30, %c4] : memref<4x9xf32, #tpu.memory_space<vmem>>, vector<4x1xf32>
    %35 = vector.shape_cast %34 : vector<4x1xf32> to vector<1x4x1xf32>
    %36 = vector.broadcast %35 : vector<1x4x1xf32> to vector<1x4x256xf32>
    %37 = arith.mulf %36, %33 : vector<1x4x256xf32>
    %38 = arith.addf %32, %37 : vector<1x4x256xf32>
    %c0_31 = arith.constant 0 : index
    %c0_32 = arith.constant 0 : index
    %c33 = arith.constant 33 : index
    %39 = vector.load %arg7[%c0_31, %c0_32, %c33] : memref<1x4x290xf32, #tpu.memory_space<vmem>>, vector<1x4x256xf32>
    %c0_33 = arith.constant 0 : index
    %c7 = arith.constant 7 : index
    %40 = vector.load %arg2[%c0_33, %c7] : memref<4x9xf32, #tpu.memory_space<vmem>>, vector<4x1xf32>
    %41 = vector.shape_cast %40 : vector<4x1xf32> to vector<1x4x1xf32>
    %42 = vector.broadcast %41 : vector<1x4x1xf32> to vector<1x4x256xf32>
    %43 = arith.mulf %42, %39 : vector<1x4x256xf32>
    %44 = arith.addf %38, %43 : vector<1x4x256xf32>
    %45 = arith.addf %27, %44 : vector<1x4x256xf32>
    %c0_34 = arith.constant 0 : index
    %c0_35 = arith.constant 0 : index
    %c2 = arith.constant 2 : index
    %46 = vector.load %arg7[%c0_34, %c0_35, %c2] : memref<1x4x290xf32, #tpu.memory_space<vmem>>, vector<1x4x256xf32>
    %c0_36 = arith.constant 0 : index
    %c2_37 = arith.constant 2 : index
    %47 = vector.load %arg2[%c0_36, %c2_37] : memref<4x9xf32, #tpu.memory_space<vmem>>, vector<4x1xf32>
    %48 = vector.shape_cast %47 : vector<4x1xf32> to vector<1x4x1xf32>
    %49 = vector.broadcast %48 : vector<1x4x1xf32> to vector<1x4x256xf32>
    %50 = arith.mulf %49, %46 : vector<1x4x256xf32>
    %c0_38 = arith.constant 0 : index
    %c0_39 = arith.constant 0 : index
    %c18 = arith.constant 18 : index
    %51 = vector.load %arg7[%c0_38, %c0_39, %c18] : memref<1x4x290xf32, #tpu.memory_space<vmem>>, vector<1x4x256xf32>
    %c0_40 = arith.constant 0 : index
    %c5 = arith.constant 5 : index
    %52 = vector.load %arg2[%c0_40, %c5] : memref<4x9xf32, #tpu.memory_space<vmem>>, vector<4x1xf32>
    %53 = vector.shape_cast %52 : vector<4x1xf32> to vector<1x4x1xf32>
    %54 = vector.broadcast %53 : vector<1x4x1xf32> to vector<1x4x256xf32>
    %55 = arith.mulf %54, %51 : vector<1x4x256xf32>
    %56 = arith.addf %50, %55 : vector<1x4x256xf32>
    %c0_41 = arith.constant 0 : index
    %c0_42 = arith.constant 0 : index
    %c34 = arith.constant 34 : index
    %57 = vector.load %arg7[%c0_41, %c0_42, %c34] : memref<1x4x290xf32, #tpu.memory_space<vmem>>, vector<1x4x256xf32>
    %c0_43 = arith.constant 0 : index
    %c8 = arith.constant 8 : index
    %58 = vector.load %arg2[%c0_43, %c8] : memref<4x9xf32, #tpu.memory_space<vmem>>, vector<4x1xf32>
    %59 = vector.shape_cast %58 : vector<4x1xf32> to vector<1x4x1xf32>
    %60 = vector.broadcast %59 : vector<1x4x1xf32> to vector<1x4x256xf32>
    %61 = arith.mulf %60, %57 : vector<1x4x256xf32>
    %62 = arith.addf %56, %61 : vector<1x4x256xf32>
    %c2_44 = arith.constant 2 : index
    %c0_45 = arith.constant 0 : index
    %63 = vector.load %arg3[%c2_44, %c0_45] : memref<3x256xf32, #tpu.memory_space<vmem>>, vector<1x256xf32>
    %64 = vector.shape_cast %63 : vector<1x256xf32> to vector<1x1x256xf32>
    %65 = vector.broadcast %64 : vector<1x1x256xf32> to vector<1x4x256xf32>
    %66 = arith.mulf %62, %65 : vector<1x4x256xf32>
    %67 = arith.addf %45, %66 : vector<1x4x256xf32>
    %cst_46 = arith.constant dense<0.000000e+00> : vector<1x256xf32>
    %68 = vector.multi_reduction <add>, %67, %cst_46 [1] : vector<1x4x256xf32> to vector<1x256xf32>
    %69 = vector.shape_cast %68 : vector<1x256xf32> to vector<1x1x256xf32>
    %c0_47 = arith.constant 0 : index
    %70 = memref.load %arg1[%c0_47] : memref<1xf32, #tpu.memory_space<smem>>
    %71 = vector.broadcast %70 : f32 to vector<1x1x256xf32>
    %72 = arith.addf %69, %71 : vector<1x1x256xf32>
    %73 = math.tanh %72 : vector<1x1x256xf32>
    %c0_48 = arith.constant 0 : index
    %c0_49 = arith.constant 0 : index
    %c0_50 = arith.constant 0 : index
    %74 = vector.load %arg6[%c0_48, %c0_49, %c0_50] : memref<1x1x256xf32, #tpu.memory_space<vmem>>, vector<1x1x256xf32>
    tpu.vector_store %arg6[%c0_48, %c0_49, %c0_50], %73 {strides = array<i32>} : memref<1x1x256xf32, #tpu.memory_space<vmem>>, vector<1x1x256xf32>,
    %75 = vector.broadcast %73 : vector<1x1x256xf32> to vector<1x4x256xf32>
    %76 = arith.addf %0, %75 : vector<1x4x256xf32>
    %c0_51 = arith.constant 0 : index
    %c0_52 = arith.constant 0 : index
    %c0_53 = arith.constant 0 : index
    %77 = vector.load %arg5[%c0_51, %c0_52, %c0_53] : memref<1x4x256xf32, #tpu.memory_space<vmem>>, vector<1x4x256xf32>
    tpu.vector_store %arg5[%c0_51, %c0_52, %c0_53], %76 {strides = array<i32>} : memref<1x4x256xf32, #tpu.memory_space<vmem>>, vector<1x4x256xf32>,
    return
  }
  func.func @transform_0(%arg0: i32) -> i32 {
    %c0_i32 = arith.constant 0 : i32
    %c0_i32_0 = arith.constant 0 : i32
    return %c0_i32 : i32
  }
  func.func @transform_1(%arg0: i32) -> (i32, i32) {
    %c0_i32 = arith.constant 0 : i32
    %c0_i32_0 = arith.constant 0 : i32
    %c0_i32_1 = arith.constant 0 : i32
    return %c0_i32, %c0_i32_0 : i32, i32
  }
  func.func @transform_2(%arg0: i32) -> (i32, i32) {
    %c0_i32 = arith.constant 0 : i32
    %c0_i32_0 = arith.constant 0 : i32
    %c0_i32_1 = arith.constant 0 : i32
    return %c0_i32, %c0_i32_0 : i32, i32
  }
  func.func @transform_3(%arg0: i32) -> (i32, i32, i32) {
    %c0_i32 = arith.constant 0 : i32
    %c0_i32_0 = arith.constant 0 : i32
    %c0_i32_1 = arith.constant 0 : i32
    return %arg0, %c0_i32, %c0_i32_0 : i32, i32, i32
  }
  func.func @transform_4(%arg0: i32) -> (i32, i32, i32) {
    %c0_i32 = arith.constant 0 : i32
    %c0_i32_0 = arith.constant 0 : i32
    %c0_i32_1 = arith.constant 0 : i32
    return %arg0, %c0_i32, %c0_i32_0 : i32, i32, i32
  }
  func.func @transform_5(%arg0: i32) -> (i32, i32, i32) {
    %c0_i32 = arith.constant 0 : i32
    %c0_i32_0 = arith.constant 0 : i32
    %c0_i32_1 = arith.constant 0 : i32
    return %arg0, %c0_i32, %c0_i32_0 : i32, i32, i32
  }
}

</mosaic_0001>

<bundles_post_ra>
// kernel: tpu_custom_call.1
= control target key start
LH: loop header
LB: loop body
LE: loop exit
PB: predicated region body
PF: predicated region fallthrough
CT: control target
= control target key end

     0   :  { %s1385_s0 = inlined_call_operand.<no memory space> [shape: f32[1], index: 0, kind: input, shape index: {}]   ;;  %s1386_s1 = inlined_call_operand.hbm [shape: f32[4,9], index: 1, kind: input, shape index: {}]   ;;  %s1387_s2 = inlined_call_operand.hbm [shape: f32[3,256], index: 2, kind: input, shape index: {}]   ;;  %s1388_s3 = inlined_call_operand.hbm [shape: f32[2,4,256], index: 3, kind: input, shape index: {}]   ;;  %s1389_s4 = inlined_call_operand.hbm [shape: f32[2,4,256], index: 4, kind: output, shape index: {0}]   ;;  %s1390_s5 = inlined_call_operand.hbm [shape: f32[2,1,256], index: 5, kind: output, shape index: {1}]  }
   0x1   :  { %11 = sst [smem:[#allocation3]] %s1385_s0 }
   0x2   :  { %12 = vsyncpa [#allocation5], 0 }
   0x3   :  { %13 = vsyncpa [#allocation8], 0 }
   0x4   :  { %14 = vsyncpa [#allocation6], 0 }
   0x5   :  { %16 = vsyncpa [#allocation6 + $0x1], 0 }
   0x6   :  { %17 = vsyncpa [#allocation12], 0 }
   0x7   :  { %19 = vsyncpa [#allocation12 + $0x1], 0  ;;  %s1156_s20 = smov 0   ;;  %s1158_s21 = smov 0  }
   0x8   :  { %s1160_s22 = smov 0   ;;  %s1162_s23 = smov 0  }
   0x9 LB: > { %s1177_s0 = sadd.s32 4294967295, %s1100_s23   ;;  %s777_s24 = sadd.s32 4294967294, %s1100_s23   ;;  %s1100_s23 = sphi %s1162_s23, %s1400_s23   ;;  %s1096_s22 = sphi %s1160_s22, %s1399_s22   ;;  %s1092_s21 = sphi %s1158_s21, %s1398_s21   ;;  %s1088_s20 = sphi %s1156_s20, %s1397_s20  }
   0xa   : > { %p108_p0 = scmp.ne.s32.totalorder %s1092_s21, %s1088_s20  ;;  %p109_p1 = scmp.eq.s32.totalorder %s1177_s0, 0 }
   0xb   : > { %p132_p2 = scmp.eq.s32.totalorder %s1177_s0, 1  ;;  %p138_p3 = scmp.eq.s32.totalorder %s777_s24, 1 }
   0xc   : > { %p1186_p4 = por %p109_p1, %p108_p0  ;;  %p778_p5 = scmp.ge.s32.totalorder %s1100_s23, 1 }
   0xd   : > { %p1191_p6 = por %p138_p3, %p108_p0  ;;  %p171_p7 = scmp.lt.s32.totalorder %s1100_s23, 3 }
   0xe   : > { %s186_s29 = sshll.u32 %s1386_s1, 4  ;;  %s1102_s6 = smov [#allocation4]   ;;  %s187_s29 = int_to_ptr.hbm [resolvable:$true] %s186_s29 }
   0xf   : > { %p1199_p8 = pnand %p778_p5, %p171_p7  ;;  %s188_s7 = sshll.u32 %s1102_s6, 4  ;;  %s189_s7 = int_to_ptr.vmem [resolvable:$true] %s188_s7 }
  0x10   : > { %s198_s10 = sshll.u32 %s1387_s2, 4  ;;  %s1103_s11 = smov [#allocation7]   ;;  %s199_s10 = int_to_ptr.hbm [resolvable:$true] %s198_s10 }
  0x11   : > { %p814_p10 = pneg %p1199_p8  ;;  %s200_s12 = sshll.u32 %s1103_s11, 4  ;;  %s201_s12 = int_to_ptr.vmem [resolvable:$true] %s200_s12 }
  0x12   : > { %s1212_s13 = sadd.s32 1, %s1100_s23   ;;  %s95_s14 = sadd.s32 1, %s1096_s22 }
  0x13   : > { %p815_p11 = pnand %p814_p10, %p109_p1  ;;  %s92_s15 = ssub.s32 %s1100_s23, %s1212_s13 }
  0x14   : > { %p102_p12 = scmp.ne.s32.totalorder %s1096_s22, %s1092_s21  ;;  %p93_p13 = scmp.eq.s32.totalorder %s92_s15, 0 }
  0x15   : > { %817 = dma.hbm_to_vmem [thread:$0]  (!%p815_p11), %s187_s29, 64, %s189_s7, [#allocation5]  }
  0x16   : > { %820 = dma.hbm_to_vmem [thread:$0]  (!%p815_p11), %s199_s10, 128, %s201_s12, [#allocation8]  }
  0x17   : > { %p103_p0 = scmp.eq.s32.totalorder %s1100_s23, 0  ;;  %p1222_p3 = por %p132_p2, %p102_p12 }
  0x18   : > { %s1227_s17 = scalar_select %p93_p13, %s1096_s22, %s95_s14  }
  0x19   : > { %p104_p5 = por %p103_p0, %p102_p12  ;;  %p834_p7 = scmp.lt.s32.totalorder %s1100_s23, 2 }
  0x1a   : > { %s211_s18 = sand.u32 1, %s1100_s23   ;;  %s213_s19 = sand.u32 1, %s1096_s22  }
  0x1b   : > { %s782_s24 = sshll.u32 %s213_s19, 3  ;;  %s798_s27 = sshll.u32 %s1100_s23, 3 }
  0x1c   : > { %s220_s6 = scalar_lea.hbm %s1388_s3, %s798_s27  ;;  %s215_s8 = scalar_lea.vmem [#allocation9], %s782_s24 }
  0x1d   : > { %s222_s7 = sshll.u32 %s220_s6, 4  ;;  %s224_s9 = sshll.u32 %s215_s8, 4  ;;  %s223_s7 = int_to_ptr.hbm [resolvable:$true] %s222_s7  ;;  %s225_s9 = int_to_ptr.vmem [resolvable:$true] %s224_s9 }
  0x1e   : > { %p1236_p2 = pnand %p834_p7, %p104_p5  ;;  %s212_s11 = scalar_lea.sflag [#allocation5], %s211_s18 }
  0x1f   : > { %s964_s12 = sshra.s32 %s223_s7, 4  ;;  %s971_s24 = scalar_lea.hbm %s1388_s3, 16  ;;  %s965_s12 = int_to_ptr.hbm [resolvable:$true] %s964_s12 }
  0x20   : > { %s966_s14 = scalar_lea.hbm %s965_s12, 8  ;;  %p968_p11 = pneg %p1236_p2 }
  0x21   : > { %p967_p10 = scmp.ne.s32.totalorder %s965_s12, %s966_s14  ;;  %p972_p0 = scmp.lt.s32.totalorder %s965_s12, %s1388_s3 }
  0x22   : > { %p973_p5 = scmp.lt.s32.totalorder %s971_s24, %s966_s14 }
  0x23   : > { %p969_p12 = pnand %p968_p11, %p967_p10 }
  0x24   : > { %p974_p7 = por %p973_p5, %p972_p0 }
  0x25   : > { %p970_p13 = pneg %p969_p12 }
  0x27   : > { %p975_p9 = pnand %p974_p7, %p970_p13 }
  0x29   : > { %978 = shalt.err (!%p975_p9)
}
  0x2a   : > { %824 = dma.hbm_to_vmem [thread:$0]  (!%p1236_p2), %s223_s7, 128, %s225_s9, %s212_s11  }
  0x2b   : > { %233 = sbr.rel (%p1199_p8) target bundleno = 427 (0x1ab), region = 36 }
  0x30   : > { %1067 = dma.done.wait (%p109_p1), [#allocation5], 64  }
  0x31   : > { %1069 = vsyncadd (%p109_p1), [#allocation5], 4294967232 }
  0x32   : > { %1071 = dma.done.wait (%p109_p1), [#allocation8], 128  }
  0x33   : > { %1073 = vsyncadd (%p109_p1), [#allocation8], 4294967168  ;;  %s245_s18 = sand.u32 1, %s1177_s0   ;;  %s1262_s29 = sand.u32 1, %s1092_s21  }
  0x34   : > { %s788_s30 = sshll.u32 %s1262_s29, 3  ;;  %s246_s6 = scalar_lea.sflag [#allocation5], %s245_s18 }
  0x35   : > { %s249_s7 = scalar_lea.vmem [#allocation9], %s788_s30 }
  0x36   : > { %1075 = dma.done.wait (%p1186_p4), %s246_s6, 128  }
  0x37   : > { %1077 = vsyncadd (%p1186_p4), %s246_s6, 4294967168  ;;  %vm283_vm0 = vcmask 134144   ;;  %v1104_v0 = vmov 0   ;;  %v1105_v1 = vmov 1   ;;  %vm285_vm1 = vcmask 273544   ;;  %v1272_v4 = vld [vmem:[%s249_s7] sm:$0xff] }
  0x38   : > { %891 = vset.pattern.permute.xlu0 %v1104_v0  ;;  %894 = vset.pattern.permute.xlu2 %v1105_v1  ;;  %v1106_v2 = vmov 3   ;;  %v1107_v3 = vmov 0.0   ;;  %v389_v5 = vld [vmem:[#allocation4] sm:$0xf]  ;;  %s1108_s8 = smov 17   ;;  %v1109_v8 = vmov 5  }
  0x39   : > { %892 = vset.pattern.permute.xlu1 %v1106_v2  ;;  %284 = vst.msk [vmem:[#allocation2] sm:$0xf] %vm283_vm0, %v1107_v3  ;;  %288 = vrot.lane.b32.xlu0 %v1272_v4, %s1108_s8  ;;  %v301_v6 = vld [vmem:[#allocation4] sm:$0xf]  ;;  %v1110_v10 = vmov 6   ;;  %v1111_v12 = vmov 7  }
  0x3a   : > { %286 = vst.msk [vmem:[#allocation2 + $0x8] sm:$0xf] %vm285_vm1, %v1107_v3  ;;  %392 = vperm.xlu2 %894, %v389_v5   ;;  %v317_v7 = vld [vmem:[#allocation4] sm:$0xf]  ;;  %v1112_v15 = vmov 2   ;;  %v1113_v16 = vmov 4  }
  0x3b   : > { %320 = vperm.xlu1 %892, %v317_v7   ;;  %v511_v9 = vld [vmem:[#allocation4] sm:$0xf]  ;;  %vm295_vm2 = vcmask 1043592   ;;  %vm296_vm3 = vcmask 1047556   ;;  %vm291_vm4 = vcmask 138240   ;;  %s1114_s25 = smov 112  }
  0x3c   : > { %v348_v11 = vld [vmem:[#allocation4] sm:$0xf]  ;;  %vm297_vm5 = vmor %vm296_vm3, %vm295_vm2  ;;  %s1115_s9 = smov 96   ;;  %s1116_s10 = smov 127   ;;  %v1119_v43 = vmov 8   ;;  %vm337_vm6 = vcmask 916480  }
  0x3d   : > { %v449_v13 = vld [vmem:[#allocation4] sm:$0xf]  ;;  %s1117_s11 = smov 111   ;;  %s1118_s12 = smov 95   ;;  %vm368_vm7 = vcmask 785408   ;;  %vm438_vm8 = vcmask 908288  }
  0x3e   : > { %v482_v14 = vld [vmem:[#allocation4] sm:$0xf]  ;;  %s1120_s14 = smov 126   ;;  %s1121_s15 = smov 110   ;;  %vm409_vm9 = vcmask 1039360   ;;  %vm469_vm10 = vcmask 777216  }
  0x3f   : > { %v418_v17 = vld [vmem:[#allocation4] sm:$0xf]  ;;  %s1122_s19 = smov 94   ;;  %vm531_vm11 = vcmask 900096   ;;  %vm502_vm12 = vcmask 1031168   ;;  %vm562_vm13 = vcmask 769024  }
  0x40   : > { %v542_v57 = vld [vmem:[#allocation4] sm:$0xf]  ;;  %vm582_vm14 = vcmask 1043456   ;;  %s597_s24 = sld [smem:[#allocation3]]  ;;  %s790_s27 = sshll.u32 %s1262_s29, 1  ;;  %vm606_vm15 = vcmask 1040384  }
  0x41   : > { %304 = vperm.xlu0 %891, %v301_v6   ;;  %s795_s28 = sshll.u32 %s1177_s0, 1  ;;  %s799_s18 = sshll.u32 %s1177_s0, 3 }
  0x42   : > { %897 = vset.pattern.permute.xlu2 %v1109_v8  ;;  %s650_s8 = scalar_lea.hbm %s1390_s5, %s795_s28  ;;  %s1014_s6 = scalar_lea.hbm %s1390_s5, 4 }
  0x43   : > { %514 = vperm.xlu2 %897, %v511_v9   ;;  %893 = vset.pattern.permute.xlu1 %v1110_v10 }
  0x44   : > { %351 = vperm.xlu1 %893, %v348_v11  }
  0x49   : > { %895 = vset.pattern.permute.xlu0 %v1113_v16 }
  0x4a   : > { %421 = vperm.xlu0 %895, %v418_v17  }
  0x4b   : > { %898 = vset.pattern.permute.xlu2 %v1111_v12 }
  0x4c   : > { %452 = vperm.xlu2 %898, %v449_v13   ;;  %896 = vset.pattern.permute.xlu1 %v1112_v15 }
  0x4d   : > { %485 = vperm.xlu1 %896, %v482_v14  }
  0x52   : > { %899 = vset.pattern.permute.xlu0 %v1119_v43  ;;  %v377_v43 = vld [vmem:[#allocation7] ss:$4 sm:$0x3] }
  0x94   : > { %v1293_v55 = vpop.permute.xlu2 %392 }
  0x9d   : > { %v1295_v58 = vpop.permute.xlu2 %514 }
  0xa6   : > { %v1298_v60 = vpop.permute.xlu2 %452 }
  0xab   : > { %v289_v18 = vpop.permute.xlu0 %288 }
  0xac   : > { %v290_v19 = vrot.slane %v289_v18, 4 }
  0xad   : > { %v321_v62 = vpop.permute.xlu1 %320 }
  0xae   : > { %v292_v20 = vsel %vm291_vm4, %v290_v19, %v289_v18  ;;  %299 = vst.msk [vmem:[#allocation2 + $0x8] sm:$0xf] %vm283_vm0, %v290_v19 }
  0xaf   : > { %298 = vst.msk [vmem:[#allocation2] sm:$0xff] %vm297_vm5, %v292_v20 }
  0xb3   : > { %v305_v63 = vpop.permute.xlu0 %304 }
  0xb5   : > { %v316_v21 = vld [vmem:[#allocation2 + $0x8] sm:$0xf] }
  0xb6   : > { %v1276_v22 = vld [vmem:[#allocation2] sm:$0xff]  ;;  %327 = vst [vmem:[#allocation1 + $0x10] ss:$2 sm:$0xff] %v316_v21  ;;  %v347_v26 = vld [vmem:[#allocation2 + $0x8] sm:$0xf]  ;;  %v352_v6 = vpop.permute.xlu1 %351 }
  0xb7   : > { %308 = vst [vmem:[#allocation1] ss:$2 sm:$0xff] %v1276_v22  ;;  %v388_v27 = vld [vmem:[#allocation2 + $0x8] sm:$0xf] }
  0xb8   : > { %v417_v31 = vld [vmem:[#allocation2 + $0x8] sm:$0xf] }
  0xb9   : > { %v448_v35 = vld [vmem:[#allocation2 + $0x8] sm:$0xf] }
  0xba   : > { %v481_v39 = vld [vmem:[#allocation2 + $0x8] sm:$0xf] }
  0xbb   : > { %v510_v44 = vld [vmem:[#allocation2 + $0x8] sm:$0xf] }
  0xbc   : > { %v541_v48 = vld [vmem:[#allocation2 + $0x8] sm:$0xf]  ;;  %v422_v9 = vpop.permute.xlu0 %421 }
  0xbd   : > { %v330_v23 = vld.sshfl [vmem:[#allocation1 + $0x10] sm:$0xff pattern:$0x75316420] }
  0xbe   : > { %335 = vrot.lane.b32.xlu2 %v330_v23, %s1114_s25  ;;  %v1279_v24 = vld.sshfl [vmem:[#allocation1] sm:$0xff pattern:$0x75316420]  ;;  %v1281_v25 = vld.sshfl [vmem:[#allocation1 + $0x8] sm:$0xff pattern:$0x75316420] }
  0xbf   : > { %325 = vst [vmem:[#allocation1] ss:$2 sm:$0xff] %v1276_v22  ;;  %v314_v2 = vmul.f32 %v1281_v25, %v305_v63  ;;  %v486_v7 = vpop.permute.xlu1 %485  ;;  %v313_v18 = vmul.f32 %v1279_v24, %v305_v63 }
  0xc0   : > { %358 = vst [vmem:[#allocation1 + $0x10] ss:$2 sm:$0xff] %v347_v26 }
  0xc6   : > { %v329_v28 = vld.sshfl [vmem:[#allocation1 + $0x8] sm:$0xff pattern:$0x75316420]  ;;  %v328_v29 = vld.sshfl [vmem:[#allocation1] sm:$0xff pattern:$0x75316420] }
  0xc7   : > { %v361_v30 = vld.sshfl [vmem:[#allocation1 + $0x10] sm:$0xff pattern:$0x75316420]  ;;  %333 = vrot.lane.b32.xlu2 %v329_v28, %s1114_s25  ;;  %356 = vst [vmem:[#allocation1] ss:$2 sm:$0xff] %v1276_v22 }
  0xc8   : > { %366 = vrot.lane.b32.xlu1 %v361_v30, %s1115_s9  ;;  %399 = vst [vmem:[#allocation1 + $0x10] ss:$2 sm:$0xff] %v388_v27 }
  0xce   : > { %v360_v32 = vld.sshfl [vmem:[#allocation1 + $0x8] sm:$0xff pattern:$0x75316420]  ;;  %v359_v33 = vld.sshfl [vmem:[#allocation1] sm:$0xff pattern:$0x75316420] }
  0xcf   : > { %v402_v34 = vld.sshfl [vmem:[#allocation1 + $0x10] sm:$0xff pattern:$0x75316420]  ;;  %364 = vrot.lane.b32.xlu0 %v360_v32, %s1115_s9  ;;  %397 = vst [vmem:[#allocation1] ss:$2 sm:$0xff] %v1276_v22 }
  0xd0   : > { %331 = vrot.lane.b32.xlu1 %v328_v29, %s1114_s25  ;;  %428 = vst [vmem:[#allocation1 + $0x10] ss:$2 sm:$0xff] %v417_v31  ;;  %407 = vrot.lane.b32.xlu2 %v402_v34, %s1116_s10 }
  0xd6   : > { %v400_v36 = vld.sshfl [vmem:[#allocation1] sm:$0xff pattern:$0x75316420]  ;;  %v401_v37 = vld.sshfl [vmem:[#allocation1 + $0x8] sm:$0xff pattern:$0x75316420] }
  0xd7   : > { %v431_v38 = vld.sshfl [vmem:[#allocation1 + $0x10] sm:$0xff pattern:$0x75316420]  ;;  %403 = vrot.lane.b32.xlu0 %v400_v36, %s1116_s10  ;;  %426 = vst [vmem:[#allocation1] ss:$2 sm:$0xff] %v1276_v22 }
  0xd8   : > { %459 = vst [vmem:[#allocation1 + $0x10] ss:$2 sm:$0xff] %v448_v35  ;;  %436 = vrot.lane.b32.xlu1 %v431_v38, %s1117_s11  ;;  %362 = vrot.lane.b32.xlu2 %v359_v33, %s1115_s9 }
  0xde   : > { %v429_v40 = vld.sshfl [vmem:[#allocation1] sm:$0xff pattern:$0x75316420]  ;;  %v430_v41 = vld.sshfl [vmem:[#allocation1 + $0x8] sm:$0xff pattern:$0x75316420] }
  0xdf   : > { %v462_v42 = vld.sshfl [vmem:[#allocation1 + $0x10] sm:$0xff pattern:$0x75316420]  ;;  %457 = vst [vmem:[#allocation1] ss:$2 sm:$0xff] %v1276_v22 }
  0xe0   : > { %405 = vrot.lane.b32.xlu1 %v401_v37, %s1116_s10  ;;  %492 = vst [vmem:[#allocation1 + $0x10] ss:$2 sm:$0xff] %v481_v39  ;;  %467 = vrot.lane.b32.xlu0 %v462_v42, %s1118_s12  ;;  %s636_s10 = scalar_lea.hbm %s1389_s4, %s799_s18 }
  0xe6   : > { %v461_v45 = vld.sshfl [vmem:[#allocation1 + $0x8] sm:$0xff pattern:$0x75316420]  ;;  %v460_v46 = vld.sshfl [vmem:[#allocation1] sm:$0xff pattern:$0x75316420] }
  0xe7   : > { %465 = vrot.lane.b32.xlu2 %v461_v45, %s1118_s12  ;;  %490 = vst [vmem:[#allocation1] ss:$2 sm:$0xff] %v1276_v22  ;;  %v495_v47 = vld.sshfl [vmem:[#allocation1 + $0x10] sm:$0xff pattern:$0x75316420] }
  0xe8   : > { %432 = vrot.lane.b32.xlu1 %v429_v40, %s1117_s11  ;;  %434 = vrot.lane.b32.xlu0 %v430_v41, %s1117_s11  ;;  %521 = vst [vmem:[#allocation1 + $0x10] ss:$2 sm:$0xff] %v510_v44  ;;  %s281_s11 = scalar_lea.vmem [#allocation11], %s790_s27 }
  0xee   : > { %v493_v49 = vld.sshfl [vmem:[#allocation1] sm:$0xff pattern:$0x75316420]  ;;  %v494_v50 = vld.sshfl [vmem:[#allocation1 + $0x8] sm:$0xff pattern:$0x75316420] }
  0xef   : > { %v524_v51 = vld.sshfl [vmem:[#allocation1 + $0x10] sm:$0xff pattern:$0x75316420]  ;;  %519 = vst [vmem:[#allocation1] ss:$2 sm:$0xff] %v1276_v22 }
  0xf0   : > { %500 = vrot.lane.b32.xlu0 %v495_v47, %s1120_s14  ;;  %552 = vst [vmem:[#allocation1 + $0x10] ss:$2 sm:$0xff] %v541_v48  ;;  %529 = vrot.lane.b32.xlu2 %v524_v51, %s1121_s15 }
  0xf1   : > { %496 = vrot.lane.b32.xlu1 %v493_v49, %s1120_s14 }
  0xf6   : > { %v523_v52 = vld.sshfl [vmem:[#allocation1 + $0x8] sm:$0xff pattern:$0x75316420]  ;;  %v522_v53 = vld.sshfl [vmem:[#allocation1] sm:$0xff pattern:$0x75316420] }
  0xf7   : > { %v555_v54 = vld.sshfl [vmem:[#allocation1 + $0x10] sm:$0xff pattern:$0x75316420]  ;;  %550 = vst [vmem:[#allocation1] ss:$2 sm:$0xff] %v1276_v22 }
  0xf8   : > { %498 = vrot.lane.b32.xlu2 %v494_v50, %s1120_s14  ;;  %s654_s14 = sshll.u32 %s650_s8, 4  ;;  %s655_s14 = int_to_ptr.hbm [resolvable:$true] %s654_s14 }
  0xf9   : > { %560 = vrot.lane.b32.xlu1 %v555_v54, %s1122_s19  ;;  %v380_v54 = vperm.slane %v377_v43, 1 }
  0xfe   : > { %v554_v56 = vld.sshfl [vmem:[#allocation1 + $0x8] sm:$0xff pattern:$0x75316420]  ;;  %v553_v59 = vld.sshfl [vmem:[#allocation1] sm:$0xff pattern:$0x75316420] }
  0xff   : > { %558 = vrot.lane.b32.xlu0 %v554_v56, %s1122_s19 }
 0x100   : > { %525 = vrot.lane.b32.xlu2 %v522_v53, %s1121_s15  ;;  %v572_v53 = vld [vmem:[#allocation7 + $0x2] ss:$4 sm:$0x3] }
 0x101   : > { %527 = vrot.lane.b32.xlu1 %v523_v52, %s1121_s15  ;;  %s1332_s15 = scalar_lea.vmem [#allocation10], %s788_s30  ;;  %s625_s30 = scalar_lea.sflag [#allocation12], %s1262_s29 }
 0x102   : > { %s638_s0 = sshll.u32 %s1332_s15, 4  ;;  %s1337_s0 = int_to_ptr.vmem [resolvable:$true] %s638_s0 }
 0x107   : > { %545 = vperm.xlu0 %899, %v542_v57  }
 0x108   : > { %556 = vrot.lane.b32.xlu2 %v553_v59, %s1122_s19  ;;  %s640_s19 = sshll.u32 %s636_s10, 4  ;;  %s1339_s19 = int_to_ptr.hbm [resolvable:$true] %s640_s19 }
 0x109   : > { %463 = vrot.lane.b32.xlu1 %v460_v46, %s1118_s12  ;;  %s652_s12 = sshll.u32 %s281_s11, 4  ;;  %s653_s12 = int_to_ptr.vmem [resolvable:$true] %s652_s12 }
 0x118   : > { %v336_v61 = vpop.permute.xlu2 %335 }
 0x121   : > { %v334_v0 = vpop.permute.xlu2 %333 }
 0x122   : > { %v339_v1 = vsel %vm337_vm6, %v334_v0, %v336_v61 }
 0x123   : > { %v343_v3 = vmul.f32 %v339_v1, %v321_v62 }
 0x125   : > { %v345_v5 = vadd.f32 %v343_v3, %v314_v2  ;;  %v575_v3 = vperm.slane %v572_v53, 1 }
 0x12a   : > { %v408_v8 = vpop.permute.xlu2 %407 }
 0x132   : > { %v363_v11 = vpop.permute.xlu2 %362 }
 0x13a   : > { %v367_v10 = vpop.permute.xlu1 %366 }
 0x141   : > { %v365_v12 = vpop.permute.xlu0 %364  ;;  %v466_v27 = vpop.permute.xlu2 %465 }
 0x142   : > { %v332_v13 = vpop.permute.xlu1 %331  ;;  %v369_v14 = vsel %vm368_vm7, %v363_v11, %v365_v12  ;;  %v370_v15 = vsel %vm368_vm7, %v365_v12, %v367_v10  ;;  %v379_v11 = vperm.slane %v377_v43, 0 }
 0x143   : > { %v338_v16 = vsel %vm337_vm6, %v332_v13, %v334_v0  ;;  %v374_v17 = vmul.f32 %v370_v15, %v352_v6  ;;  %v373_v20 = vmul.f32 %v369_v14, %v352_v6  ;;  %v574_v14 = vperm.slane %v572_v53, 0 }
 0x144   : > { %v342_v19 = vmul.f32 %v338_v16, %v321_v62 }
 0x145   : > { %v376_v21 = vadd.f32 %v374_v17, %v345_v5 }
 0x146   : > { %v344_v22 = vadd.f32 %v342_v19, %v313_v18 }
 0x147   : > { %v384_v15 = vmul.f32 %v380_v54, %v376_v21 }
 0x148   : > { %v1304_v23 = vadd.f32 %v373_v20, %v344_v22 }
 0x149   : > { %v404_v26 = vpop.permute.xlu0 %403 }
 0x14a   : > { %v437_v25 = vpop.permute.xlu1 %436  ;;  %v530_v30 = vpop.permute.xlu2 %529  ;;  %v383_v22 = vmul.f32 %v379_v11, %v1304_v23 }
 0x152   : > { %v406_v28 = vpop.permute.xlu1 %405  ;;  %v468_v29 = vpop.permute.xlu0 %467 }
 0x153   : > { %v499_v34 = vpop.permute.xlu2 %498  ;;  %v411_v38 = vsel %vm409_vm9, %v406_v28, %v408_v8  ;;  %v471_v44 = vsel %vm469_vm10, %v466_v27, %v468_v29  ;;  %v410_v57 = vsel %vm409_vm9, %v404_v26, %v406_v28 }
 0x154   : > { %v415_v41 = vmul.f32 %v411_v38, %v1293_v55  ;;  %v475_v56 = vmul.f32 %v471_v44, %v1298_v60  ;;  %v414_v12 = vmul.f32 %v410_v57, %v1293_v55 }
 0x15a   : > { %v433_v31 = vpop.permute.xlu1 %432  ;;  %v435_v32 = vpop.permute.xlu0 %434 }
 0x15b   : > { %v526_v24 = vpop.permute.xlu2 %525  ;;  %v440_v37 = vsel %vm438_vm8, %v435_v32, %v437_v25  ;;  %v439_v47 = vsel %vm438_vm8, %v433_v31, %v435_v32 }
 0x15c   : > { %v444_v39 = vmul.f32 %v440_v37, %v422_v9  ;;  %v443_v59 = vmul.f32 %v439_v47, %v422_v9 }
 0x15e   : > { %v446_v48 = vadd.f32 %v444_v39, %v415_v41 }
 0x160   : > { %v477_v0 = vadd.f32 %v475_v56, %v446_v48 }
 0x162   : > { %v501_v35 = vpop.permute.xlu0 %500  ;;  %v479_v19 = vadd.f32 %v477_v0, %v384_v15 }
 0x163   : > { %v497_v33 = vpop.permute.xlu1 %496  ;;  %v504_v50 = vsel %vm502_vm12, %v499_v34, %v501_v35  ;;  %v557_v62 = vpop.permute.xlu2 %556 }
 0x164   : > { %v503_v49 = vsel %vm502_vm12, %v497_v33, %v499_v34  ;;  %v508_v63 = vmul.f32 %v504_v50, %v486_v7 }
 0x165   : > { %v507_v61 = vmul.f32 %v503_v49, %v486_v7  ;;  %v445_v7 = vadd.f32 %v443_v59, %v414_v12 }
 0x16b   : > { %v561_v36 = vpop.permute.xlu1 %560 }
 0x171   : > { %v559_v40 = vpop.permute.xlu0 %558 }
 0x172   : > { %v563_v1 = vsel %vm562_vm13, %v557_v62, %v559_v40  ;;  %v564_v2 = vsel %vm562_vm13, %v559_v40, %v561_v36  ;;  %v598_v36 = vstv %s597_s24  ;;  %s1008_s24 = sshra.s32 %s655_s14, 4  ;;  %s1009_s24 = int_to_ptr.hbm [resolvable:$true] %s1008_s24 }
 0x173   : > { %v528_v42 = vpop.permute.xlu1 %527  ;;  %s1010_s27 = scalar_lea.hbm %s1009_s24, 2  ;;  %p1015_p9 = scmp.lt.s32.totalorder %s1009_s24, %s1390_s5 }
 0x174   : > { %v532_v45 = vsel %vm531_vm11, %v526_v24, %v528_v42  ;;  %v533_v46 = vsel %vm531_vm11, %v528_v42, %v530_v30  ;;  %v609_v42 = vlaneseq  ;;  %p1011_p1 = scmp.ne.s32.totalorder %s1009_s24, %s1010_s27  ;;  %p1016_p2 = scmp.lt.s32.totalorder %s1014_s6, %s1010_s27 }
 0x175   : > { %v536_v51 = vmul.f32 %v532_v45, %v1295_v58  ;;  %v537_v52 = vmul.f32 %v533_v46, %v1295_v58 }
 0x176   : > { %vm611_vm0 = vcmp.lt.s32.totalorder %v609_v42, 256  ;;  %p1012_p4 = pnand %p1011_p1, %p1222_p3  ;;  %p1017_p10 = por %p1016_p2, %p1015_p9 }
 0x177   : > { %v538_v6 = vadd.f32 %v536_v51, %v507_v61  ;;  %v539_v8 = vadd.f32 %v537_v52, %v508_v63 }
 0x178   : > { %p1013_p8 = pneg %p1012_p4 }
 0x179   : > { %v546_v5 = vpop.permute.xlu0 %545 }
 0x17a   : > { %v567_v10 = vmul.f32 %v563_v1, %v546_v5  ;;  %v568_v58 = vmul.f32 %v564_v2, %v546_v5  ;;  %p1018_p11 = pnand %p1017_p10, %p1013_p8 }
 0x17b   : > { %v464_v13 = vpop.permute.xlu1 %463 }
 0x17c   : > { %v470_v9 = vsel %vm469_vm10, %v464_v13, %v466_v27  ;;  %v569_v16 = vadd.f32 %v567_v10, %v538_v6  ;;  %v570_v17 = vadd.f32 %v568_v58, %v539_v8 }
 0x17d   : > { %v474_v18 = vmul.f32 %v470_v9, %v1298_v60 }
 0x17e   : > { %v579_v20 = vmul.f32 %v575_v3, %v570_v17  ;;  %v578_v26 = vmul.f32 %v574_v14, %v569_v16 }
 0x17f   : > { %v476_v25 = vadd.f32 %v474_v18, %v445_v7 }
 0x180   : > { %v581_v28 = vadd.f32 %v579_v20, %v479_v19 }
 0x181   : > { %v478_v29 = vadd.f32 %v476_v25, %v383_v22 }
 0x182   : > { %v590_v55 = vsel %vm582_vm14, %v581_v28, 0.0 }
 0x183   : > { %v580_v30 = vadd.f32 %v578_v26, %v478_v29  ;;  %v591_v21 = vrot.slane %v590_v55, 4 }
 0x185   : > { %v583_v27 = vsel %vm582_vm14, %v580_v30, 0.0  ;;  %v592_v31 = vadd.f32 %v591_v21, %v590_v55 }
 0x186   : > { %v584_v60 = vrot.slane %v583_v27, 4 }
 0x187   : > { %v593_v32 = vrot.slane %v592_v31, 2 }
 0x188   : > { %v585_v33 = vadd.f32 %v584_v60, %v583_v27 }
 0x189   : > { %v594_v23 = vadd.f32 %v593_v32, %v592_v31 }
 0x18a   : > { %v586_v34 = vrot.slane %v585_v33, 2 }
 0x18b   : > { %v595_v35 = vrot.slane %v594_v23, 1 }
 0x18c   : > { %v587_v24 = vadd.f32 %v586_v34, %v585_v33 }
 0x18d   : > { %v596_v37 = vadd.f32 %v595_v35, %v594_v23 }
 0x18e   : > { %v588_v38 = vrot.slane %v587_v24, 1 }
 0x18f   : > { %v600_v39 = vadd.f32 %v598_v36, %v596_v37 }
 0x190   : > { %v589_v40 = vadd.f32 %v588_v38, %v587_v24 }
 0x191   : > { %900 = vtanh.f32 %v600_v39 }
 0x192   : > { %v599_v41 = vadd.f32 %v598_v36, %v589_v40 }
 0x194   : > { %902 = vtanh.f32 %v599_v41 }
 0x197   : > { %v901_v43 = vpop.eup %900 }
 0x198   : > { %v614_v44 = vrot.slane %v901_v43, 4  ;;  %v605_v45 = vrot.slane %v901_v43, 7 }
 0x19a   : > { %v903_v46 = vpop.eup %902 }
 0x19b   : > { %v615_v47 = vsel %vm582_vm14, %v903_v46, %v614_v44  ;;  %v607_v48 = vsel %vm606_vm15, %v903_v46, %v605_v45 }
 0x19c   : > { %v617_v49 = vadd.f32 %v615_v47, %v1272_v4  ;;  %613 = vst.msk [vmem:[%s281_s11] sm:$0x3] %vm611_vm0, %v607_v48 }
 0x19d   : > { %1021 = shalt.err (!%p1018_p11)
}
 0x19e   : > { %811 = dma.vmem_to_hbm [thread:$0]  (%p1222_p3), %s653_s12, 32, %s655_s14, %s625_s30   ;;  %618 = vst [vmem:[%s1332_s15] sm:$0xff] %v617_v49 }
 0x19f   : > { %s620_s25 = scalar_lea.sflag [#allocation6], %s1262_s29  ;;  %s1036_s9 = sshra.s32 %s1339_s19, 4  ;;  %s1037_s9 = int_to_ptr.hbm [resolvable:$true] %s1036_s9 }
 0x1a0   : > { %s1038_s10 = scalar_lea.hbm %s1037_s9, 8  ;;  %s1042_s27 = scalar_lea.hbm %s1389_s4, 16 }
 0x1a1   : > { %p1039_p12 = scmp.ne.s32.totalorder %s1037_s9, %s1038_s10  ;;  %p1043_p5 = scmp.lt.s32.totalorder %s1037_s9, %s1389_s4 }
 0x1a2   : > { %p1044_p7 = scmp.lt.s32.totalorder %s1042_s27, %s1038_s10 }
 0x1a3   : > { %p1040_p13 = pnand %p1039_p12, %p1222_p3 }
 0x1a4   : > { %p1045_p1 = por %p1044_p7, %p1043_p5 }
 0x1a5   : > { %p1041_p0 = pneg %p1040_p13 }
 0x1a7   : > { %p1046_p4 = pnand %p1045_p1, %p1041_p0 }
 0x1a9   : > { %1049 = shalt.err (!%p1046_p4)
}
 0x1aa   : > { %810 = dma.vmem_to_hbm [thread:$0]  (%p1222_p3), %s1337_s0, 128, %s1339_s19, %s620_s25  }
 0x1ab PF: > { %s666_s29 = sand.u32 1, %s1088_s20   ;;  %p1396_p8 = scmp.ge.s32.totalorder %s1100_s23, 2 }
 0x1ac   : > { %s667_s12 = scalar_lea.sflag [#allocation6], %s666_s29 }
 0x1ad   : > { %p826_p9 = pnand %p1396_p8, %p1191_p6 }
 0x1af   : > { %p827_p2 = pneg %p826_p9 }
 0x1b1   : > { %1079 = dma.done.wait (%p827_p2), %s667_s12, 128  }
 0x1b2   : > { %1081 = vsyncadd (%p827_p2), %s667_s12, 4294967168  ;;  %s677_s14 = scalar_lea.sflag [#allocation12], %s666_s29 }
 0x1b3   : > { %1083 = dma.done.wait (%p827_p2), %s677_s14, 32  }
 0x1b4   : > { %1085 = vsyncadd (%p827_p2), %s677_s14, 4294967264  ;;  %p22_p3 = scmp.ge.s32.totalorder %s1212_s13, 4   ;;  %s1397_s20 = smov %s1092_s21 }
 0x1b5   : > { %s1398_s21 = smov %s1096_s22  ;;  %s1399_s22 = smov %s1227_s17 }
 0x1b6   : > { %s1400_s23 = smov %s1212_s13  ;;  %24 = sbr.rel (!%p22_p3) target bundleno = 9 (0x9), region = 114 }
 0x1bb   :  { %683 = vsyncpa [#allocation5], 1 }
 0x1bc   :  { %685 = vsyncpa [#allocation5 + $0x1], 1 }
 0x1bd   :  { %686 = vsyncpa [#allocation8], 1 }
 0x1be   :  { %687 = vsyncpa [#allocation6], 1 }
 0x1bf   :  { %689 = vsyncpa [#allocation6 + $0x1], 1 }
 0x1c0   :  { %690 = vsyncpa [#allocation12], 1 }
 0x1c1   :  { %692 = vsyncpa [#allocation12 + $0x1], 1 }

</bundles_post_ra>
